<compile_context>
chip_gen: v7x
topology: tpu7x:2x2x1
jax: 0.10.0
libtpu: 0.0.40
codegen_flags: <defaults>
</compile_context>

<pallas_src>
import functools

import jax
import jax.numpy as jnp
from jax.experimental import pallas as pl
from jax.experimental.pallas import tpu as pltpu


_VMEM_TILE_BUDGET = 4 * 1024 * 1024   # bytes per in-flight feature block
_VMEM_LIMIT = 32 * 1024 * 1024        # explicit scoped-VMEM limit (safe on v5e/v6e/v7x)


def _pick_p_tile(P, bytes_per_p, budget=_VMEM_TILE_BUDGET):
    """Largest P tile that divides P, is a multiple of 128 and fits the budget.

    Falls back to the full P (single block) when P is small or when no suitable
    divisor exists (ragged/padded tiles would be unsafe for the global reduction).
    """
    if P * bytes_per_p <= budget:
        return P
    best = None
    t = 128
    while t <= P and t * bytes_per_p <= budget:
        if P % t == 0:
            best = t
        t += 128
    return best if best is not None else P


def _feature_block_spec(B, C, Pt, n_tiles):
    kwargs = {}
    if n_tiles > 2:
        # Deeper buffering keeps the DMA hidden when the grid has several steps.
        kwargs["pipeline_mode"] = pl.Buffered(3)
    return pl.BlockSpec((B, C, Pt), lambda p: (0, 0, p), **kwargs)


# ----------------------------- spatial mode ---------------------------------

def _spatial_kernel(w_ref, f_ref, o_ref):
    # w_ref: (1, C)   f_ref: (B, C, Pt)   o_ref: (B, Pt)
    w = w_ref[...]
    # Unrolled over the (small) resident batch: each step is a [1,C]@[C,Pt]
    # MXU matmul with f32 accumulation.  The kernel is HBM-bound, so the M=1
    # MXU shape is irrelevant.
    for b in range(f_ref.shape[0]):
        row = jnp.dot(w, f_ref[b], preferred_element_type=jnp.float32)  # (1, Pt)
        o_ref[b, :] = row[0].astype(o_ref.dtype)


def featurenerf_forward_spatial(feature_nchw, conv_weight):
    """feature_nchw: [B, C, Hf, Wf] encoder output (C=512 for the resnet18 branch).
    conv_weight:  [1, C, 1, 1]  (Conv2d(C, 1, kernel_size=1, bias=False) weight).
    Returns [B, Hf*Wf] == torch.flatten(conv(feature), start_dim=1)."""
    B, C, Hf, Wf = feature_nchw.shape
    P = Hf * Wf
    f = feature_nchw.reshape(B, C, P)        # free, contiguous reshape of NCHW
    w = conv_weight.reshape(1, C)

    Pt = _pick_p_tile(P, B * C * feature_nchw.dtype.itemsize)
    n_tiles = P // Pt

    out = pl.pallas_call(
        _spatial_kernel,
        out_shape=jax.ShapeDtypeStruct((B, P), feature_nchw.dtype),
        grid_spec=pltpu.PrefetchScalarGridSpec(
            num_scalar_prefetch=0,
            grid=(n_tiles,),
            in_specs=[
                pl.BlockSpec((1, C), lambda p: (0, 0)),      # shared conv weight
                _feature_block_spec(B, C, Pt, n_tiles),      # (B, C, Pt) slab
            ],
            out_specs=pl.BlockSpec((B, Pt), lambda p: (0, p)),  # lane-dense [B, Pt]
        ),
        compiler_params=pltpu.CompilerParams(
            # TODO(synk): on v7x, pltpu.CORE_PARALLEL on this axis would shard
            # the P tiles across both TensorCores.
            dimension_semantics=("parallel",),
            vmem_limit_bytes=_VMEM_LIMIT,
        ),
    )(w, f)
    return out


# ------------------------------ global mode ---------------------------------

def _global_kernel(f_ref, o_ref, acc_ref, *, inv_p):
    # f_ref: (B, C, Pt)   o_ref: (B, C)   acc_ref: (B, C) f32
    p = pl.program_id(0)

    @pl.when(p == 0)
    def _init():
        acc_ref[...] = jnp.zeros_like(acc_ref)

    # f32 accumulation of the lane(P)-axis partial sum (safe for bf16 inputs).
    acc_ref[...] += jnp.sum(f_ref[...].astype(jnp.float32), axis=-1)

    @pl.when(p == pl.num_programs(0) - 1)
    def _finalize():
        o_ref[...] = (acc_ref[...] * inv_p).astype(o_ref.dtype)


def featurenerf_forward_global(feature_nchw):
    """feature_nchw: [B, C, H', W'] (layer4 output).
    Returns [B, C] == flatten(AdaptiveAvgPool2d((1,1))(feature), start_dim=1)."""
    B, C, Hf, Wf = feature_nchw.shape
    P = Hf * Wf
    f = feature_nchw.reshape(B, C, P)        # no HBM transpose: natural NCHW layout

    Pt = _pick_p_tile(P, B * C * feature_nchw.dtype.itemsize)
    n_tiles = P // Pt

    out = pl.pallas_call(
        functools.partial(_global_kernel, inv_p=1.0 / P),
        out_shape=jax.ShapeDtypeStruct((B, C), feature_nchw.dtype),
        grid_spec=pltpu.PrefetchScalarGridSpec(
            num_scalar_prefetch=0,
            grid=(n_tiles,),
            in_specs=[_feature_block_spec(B, C, Pt, n_tiles)],
            out_specs=pl.BlockSpec((B, C), lambda p: (0, 0)),   # resident output
            scratch_shapes=[pltpu.VMEM((B, C), jnp.float32)],
        ),
        compiler_params=pltpu.CompilerParams(
            dimension_semantics=("arbitrary",),   # reduction over P tiles
            vmem_limit_bytes=_VMEM_LIMIT,
        ),
    )(f)
    return out


# --------------------------------- main --------------------------------------

if __name__ == "__main__":
    key = jax.random.PRNGKey(0)
    k_feat, k_w = jax.random.split(key, 2)

    # Shapes consistent with the module: resnet18 branch -> 512 feature channels;
    # encoder feature map at 16x16 spatial resolution; batch 2.
    B, C, Hf, Wf = 2, 512, 16, 16
    feature = jax.random.normal(k_feat, (B, C, Hf, Wf), dtype=jnp.float32)

    # Deterministic init of the module's own parameter:
    # nn.Conv2d(512, 1, kernel_size=1, stride=1, padding=0, bias=False)
    conv_w = jax.random.normal(k_w, (1, C, 1, 1), dtype=jnp.float32) * 0.02

    # spatial mode (forward_spatial hot path)
    out_spatial = featurenerf_forward_spatial(feature, conv_w)
    jax.block_until_ready(out_spatial)
    ref_spatial = jnp.einsum("bchw,c->bhw", feature, conv_w.reshape(C)).reshape(B, -1)
    assert out_spatial.shape == (B, Hf * Wf)
    assert jnp.allclose(out_spatial, ref_spatial, atol=1e-3, rtol=1e-3)

    # global mode (forward_global avgpool + flatten hot path)
    out_global = featurenerf_forward_global(feature)
    jax.block_until_ready(out_global)
    ref_global = jnp.mean(feature, axis=(2, 3))
    assert out_global.shape == (B, C)
    assert jnp.allclose(out_global, ref_global, atol=1e-4, rtol=1e-4)

    print("KERNEL_OK")
</pallas_src>

<mosaic_0001>
module attributes {stable_mosaic.version = 11 : i64} {
  func.func @_spatial_kernel(%arg0: i32, %arg1: memref<1x512xf32, #tpu.memory_space<vmem>>, %arg2: memref<2x512x256xf32, #tpu.memory_space<vmem>>, %arg3: memref<2x256xf32, #tpu.memory_space<vmem>>) attributes {dimension_semantics = [#tpu.dimension_semantics<parallel>], iteration_bounds = array<i64: 1>, scalar_prefetch = 0 : i64, scratch_operands = 0 : i64, tpu.core_type = #tpu.core_type<tc>, window_params = [{pipeline_mode = #tpu.pipeline_mode<synchronous>, transform_indices = @transform_0, window_bounds = array<i64: 1, 512>}, {transform_indices = @transform_1, window_bounds = array<i64: 2, 512, 256>}, {transform_indices = @transform_2, window_bounds = array<i64: 2, 256>}]} {
    %c0 = arith.constant 0 : index
    %c0_0 = arith.constant 0 : index
    %0 = vector.load %arg1[%c0, %c0_0] : memref<1x512xf32, #tpu.memory_space<vmem>>, vector<1x512xf32>
    %c0_1 = arith.constant 0 : index
    %c0_2 = arith.constant 0 : index
    %c0_3 = arith.constant 0 : index
    %1 = vector.load %arg2[%c0_1, %c0_2, %c0_3] : memref<2x512x256xf32, #tpu.memory_space<vmem>>, vector<1x512x256xf32>
    %2 = vector.shape_cast %1 : vector<1x512x256xf32> to vector<512x256xf32>
    %cst = arith.constant dense<0.000000e+00> : vector<1x256xf32>
    %3 = tpu.matmul %0, %2, %cst {dimension_numbers = #tpu.dot_dimension_numbers<[1], [0], [0], [1], [0, 0, 1, 1], [], []>} : vector<1x512xf32>, vector<512x256xf32>, vector<1x256xf32> -> vector<1x256xf32>
    %4 = vector.shape_cast %3 : vector<1x256xf32> to vector<256xf32>
    %c0_4 = arith.constant 0 : index
    %c0_5 = arith.constant 0 : index
    %5 = vector.load %arg3[%c0_4, %c0_5] : memref<2x256xf32, #tpu.memory_space<vmem>>, vector<1x256xf32>
    %6 = vector.shape_cast %5 : vector<1x256xf32> to vector<256xf32>
    %7 = vector.shape_cast %4 : vector<256xf32> to vector<1x256xf32>
    tpu.vector_store %arg3[%c0_4, %c0_5], %7 {strides = array<i32>} : memref<2x256xf32, #tpu.memory_space<vmem>>, vector<1x256xf32>,
    %c1 = arith.constant 1 : index
    %c0_6 = arith.constant 0 : index
    %c0_7 = arith.constant 0 : index
    %8 = vector.load %arg2[%c1, %c0_6, %c0_7] : memref<2x512x256xf32, #tpu.memory_space<vmem>>, vector<1x512x256xf32>
    %9 = vector.shape_cast %8 : vector<1x512x256xf32> to vector<512x256xf32>
    %cst_8 = arith.constant dense<0.000000e+00> : vector<1x256xf32>
    %10 = tpu.matmul %0, %9, %cst_8 {dimension_numbers = #tpu.dot_dimension_numbers<[1], [0], [0], [1], [0, 0, 1, 1], [], []>} : vector<1x512xf32>, vector<512x256xf32>, vector<1x256xf32> -> vector<1x256xf32>
    %11 = vector.shape_cast %10 : vector<1x256xf32> to vector<256xf32>
    %c1_9 = arith.constant 1 : index
    %c0_10 = arith.constant 0 : index
    %12 = vector.load %arg3[%c1_9, %c0_10] : memref<2x256xf32, #tpu.memory_space<vmem>>, vector<1x256xf32>
    %13 = vector.shape_cast %12 : vector<1x256xf32> to vector<256xf32>
    %14 = vector.shape_cast %11 : vector<256xf32> to vector<1x256xf32>
    tpu.vector_store %arg3[%c1_9, %c0_10], %14 {strides = array<i32>} : memref<2x256xf32, #tpu.memory_space<vmem>>, vector<1x256xf32>,
    return
  }
  func.func @transform_0(%arg0: i32) -> (i32, i32) {
    %c0_i32 = arith.constant 0 : i32
    %c0_i32_0 = arith.constant 0 : i32
    %c0_i32_1 = arith.constant 0 : i32
    return %c0_i32, %c0_i32_0 : i32, i32
  }
  func.func @transform_1(%arg0: i32) -> (i32, i32, i32) {
    %c0_i32 = arith.constant 0 : i32
    %c0_i32_0 = arith.constant 0 : i32
    %c0_i32_1 = arith.constant 0 : i32
    return %c0_i32, %c0_i32_0, %arg0 : i32, i32, i32
  }
  func.func @transform_2(%arg0: i32) -> (i32, i32) {
    %c0_i32 = arith.constant 0 : i32
    %c0_i32_0 = arith.constant 0 : i32
    return %c0_i32, %arg0 : i32, i32
  }
}

</mosaic_0001>

<bundles_post_ra>
// kernel: tpu_custom_call.1
= control target key start
LH: loop header
LB: loop body
LE: loop exit
PB: predicated region body
PF: predicated region fallthrough
CT: control target
= control target key end

     0   :  { %7 = vsyncpa [#allocation3], 0  ;;  %s1077_s0 = inlined_call_operand.hbm [shape: f32[1,512], index: 0, kind: input, shape index: {}]   ;;  %s1078_s1 = inlined_call_operand.hbm [shape: f32[2,512,256], index: 1, kind: input, shape index: {}]   ;;  %s1079_s2 = inlined_call_operand.hbm [shape: f32[2,256], index: 2, kind: output, shape index: {}]  }
   0x1   :  { %8 = vsyncpa [#allocation6], 0 }
   0x2   :  { %9 = vsyncpa [#allocation4], 0  ;;  %s998_s9 = smov [#allocation2]   ;;  %s999_s11 = smov [#allocation5]  }
   0x3   :  { %s16_s10 = sshll.u32 %s998_s9, 4  ;;  %s25_s12 = sshll.u32 %s999_s11, 4  ;;  %s17_s10 = int_to_ptr.vmem [resolvable:$true] %s16_s10  ;;  %s1019_s12 = int_to_ptr.vmem [resolvable:$true] %s25_s12 }
   0x4   :  { %s926_s15 = scalar_lea.hbm %s1077_s0, 64 }
   0x5   :  { %p927_p0 = scmp.ne.s32.totalorder %s1077_s0, %s926_s15  ;;  %p930_p1 = scmp.lt.u32.totalorder %s926_s15, %s1077_s0 }
   0x7   :  { %p932_p2 = pnand %p930_p1, %p927_p0 }
   0x9   :  { %935 = shalt.err (!%p932_p2)
}
   0xa   :  { %s936_s20 = scalar_lea.vmem %s17_s10, 64  ;;  %p941_p4 = scmp.lt.s32.totalorder %s17_s10, %s17_s10 }
   0xb   :  { %p937_p3 = scmp.ne.s32.totalorder %s17_s10, %s936_s20  ;;  %p942_p5 = scmp.lt.s32.totalorder %s936_s20, %s936_s20 }
   0xd   :  { %p943_p6 = por %p942_p5, %p941_p4 }
   0xf   :  { %p944_p7 = pnand %p943_p6, %p937_p3 }
  0x11   :  { %947 = shalt.err (!%p944_p7)
}
  0x12   :  { %19 = dma.hbm_to_vmem [thread:$0]  %s1077_s0, 64, %s17_s10, [#allocation3]  }
  0x13   :  { %s948_s25 = scalar_lea.hbm %s1078_s1, 32768 }
  0x14   :  { %p949_p8 = scmp.ne.s32.totalorder %s1078_s1, %s948_s25  ;;  %p952_p9 = scmp.lt.u32.totalorder %s948_s25, %s1078_s1 }
  0x16   :  { %p954_p10 = pnand %p952_p9, %p949_p8 }
  0x18   :  { %957 = shalt.err (!%p954_p10)
}
  0x19   :  { %s958_s30 = scalar_lea.vmem %s1019_s12, 32768  ;;  %p963_p12 = scmp.lt.s32.totalorder %s1019_s12, %s1019_s12 }
  0x1a   :  { %p959_p11 = scmp.ne.s32.totalorder %s1019_s12, %s958_s30  ;;  %p964_p13 = scmp.lt.s32.totalorder %s958_s30, %s958_s30 }
  0x1c   :  { %p965_p0 = por %p964_p13, %p963_p12 }
  0x1e   :  { %p966_p1 = pnand %p965_p0, %p959_p11 }
  0x20   :  { %969 = shalt.err (!%p966_p1)
}
  0x21   :  { %s1000_s0 = smov 256   ;;  %s1001_s3 = smov 16  }
  0x22   :  { %31 = dma.hbm_to_vmem [thread:$0]  %s1078_s1, 32768, %s1019_s12, [#allocation6], %s1000_s0, %s1000_s0, %s1001_s3  }
  0x23   :  { %992 = dma.done.wait [#allocation3], 64  }
  0x24   :  { %993 = vsyncadd [#allocation3], 4294967232 }
  0x25   :  { %994 = dma.done.wait [#allocation6], 32768  }
  0x26   :  { %995 = vsyncadd [#allocation6], 4294934528  ;;  %v40_v0 = vld [vmem:[#allocation5 + $0x8] sm:$0xff]  ;;  %v42_v1 = vld [vmem:[#allocation5 + $0x18] sm:$0xff]  ;;  %s1003_s1 = smov [#allocation7]  }
  0x27   :  { %v355_v2 = vld [vmem:[#allocation5 + $0x408] sm:$0xff]  ;;  %v660_v3 = vpack.c.bf16 %v42_v1, %v40_v0  ;;  %v357_v4 = vld [vmem:[#allocation5 + $0x418] sm:$0xff]  ;;  %v39_v5 = vld [vmem:[#allocation5] sm:$0xff]  ;;  %s650_s6 = sshll.u32 %s1003_s1, 4  ;;  %s651_s6 = int_to_ptr.vmem [resolvable:$true] %s650_s6 }
  0x28   :  { %v41_v6 = vld [vmem:[#allocation5 + $0x10] sm:$0xff]  ;;  %v788_v7 = vpack.c.bf16 %v357_v4, %v355_v2  ;;  %v354_v9 = vld [vmem:[#allocation5 + $0x400] sm:$0xff]  ;;  %v44_v11 = vld [vmem:[#allocation5 + $0x28] sm:$0xff]  ;;  %s970_s7 = scalar_lea.vmem %s651_s6, 64  ;;  %p975_p3 = scmp.lt.s32.totalorder %s651_s6, %s651_s6 }
  0x29   :  { %v662_v8 = vpack.c.bf16 %v41_v6, %v39_v5  ;;  %v356_v10 = vld [vmem:[#allocation5 + $0x410] sm:$0xff]  ;;  %661 = vmatprep.subr.bf16.mxu0 %v660_v3  ;;  %v46_v13 = vld [vmem:[#allocation5 + $0x38] sm:$0xff]  ;;  %v359_v14 = vld [vmem:[#allocation5 + $0x428] sm:$0xff]  ;;  %p971_p2 = scmp.ne.s32.totalorder %s651_s6, %s970_s7  ;;  %p976_p4 = scmp.lt.s32.totalorder %s970_s7, %s970_s7 }
  0x2a   :  { %v790_v12 = vpack.c.bf16 %v356_v10, %v354_v9  ;;  %v361_v15 = vld [vmem:[#allocation5 + $0x438] sm:$0xff]  ;;  %789 = vmatprep.subr.bf16.mxu1 %v788_v7  ;;  %v664_v16 = vpack.c.bf16 %v46_v13, %v44_v11  ;;  %v43_v18 = vld [vmem:[#allocation5 + $0x20] sm:$0xff]  ;;  %v45_v19 = vld [vmem:[#allocation5 + $0x30] sm:$0xff] }
  0x2b   :  { %663 = vmatpush1.bf16.msra.mxu0 %v662_v8  ;;  %v792_v17 = vpack.c.bf16 %v361_v15, %v359_v14  ;;  %v358_v20 = vld [vmem:[#allocation5 + $0x420] sm:$0xff]  ;;  %v666_v21 = vpack.c.bf16 %v45_v19, %v43_v18  ;;  %v360_v22 = vld [vmem:[#allocation5 + $0x430] sm:$0xff]  ;;  %v48_v23 = vld [vmem:[#allocation5 + $0x48] sm:$0xff]  ;;  %p977_p5 = por %p976_p4, %p975_p3 }
  0x2c   :  { %791 = vmatpush1.bf16.msra.mxu1 %v790_v12  ;;  %v50_v24 = vld [vmem:[#allocation5 + $0x58] sm:$0xff]  ;;  %665 = vmatprep.subr.bf16.mxu0 %v664_v16  ;;  %v794_v25 = vpack.c.bf16 %v360_v22, %v358_v20  ;;  %v363_v27 = vld [vmem:[#allocation5 + $0x448] sm:$0xff]  ;;  %v47_v29 = vld [vmem:[#allocation5 + $0x40] sm:$0xff] }
  0x2d   :  { %793 = vmatprep.subr.bf16.mxu1 %v792_v17  ;;  %v668_v26 = vpack.c.bf16 %v50_v24, %v48_v23  ;;  %v365_v28 = vld [vmem:[#allocation5 + $0x458] sm:$0xff]  ;;  %v49_v31 = vld [vmem:[#allocation5 + $0x50] sm:$0xff]  ;;  %v362_v32 = vld [vmem:[#allocation5 + $0x440] sm:$0xff]  ;;  %p978_p6 = pnand %p977_p5, %p971_p2 }
  0x2e   :  { %v796_v30 = vpack.c.bf16 %v365_v28, %v363_v27  ;;  %v364_v33 = vld [vmem:[#allocation5 + $0x450] sm:$0xff]  ;;  %v670_v34 = vpack.c.bf16 %v49_v31, %v47_v29  ;;  %v52_v35 = vld [vmem:[#allocation5 + $0x68] sm:$0xff]  ;;  %v54_v36 = vld [vmem:[#allocation5 + $0x78] sm:$0xff] }
  0x2f   :  { %667 = vmatpush1.bf16.msra.mxu0 %v666_v21  ;;  %v367_v37 = vld [vmem:[#allocation5 + $0x468] sm:$0xff]  ;;  %v798_v38 = vpack.c.bf16 %v364_v33, %v362_v32  ;;  %v672_v39 = vpack.c.bf16 %v54_v36, %v52_v35  ;;  %v369_v40 = vld [vmem:[#allocation5 + $0x478] sm:$0xff]  ;;  %v51_v41 = vld [vmem:[#allocation5 + $0x60] sm:$0xff] }
  0x30   :  { %795 = vmatpush1.bf16.msra.mxu1 %v794_v25  ;;  %669 = vmatprep.subr.bf16.mxu0 %v668_v26  ;;  %v53_v42 = vld [vmem:[#allocation5 + $0x70] sm:$0xff]  ;;  %v800_v43 = vpack.c.bf16 %v369_v40, %v367_v37  ;;  %v366_v44 = vld [vmem:[#allocation5 + $0x460] sm:$0xff]  ;;  %v56_v46 = vld [vmem:[#allocation5 + $0x88] sm:$0xff] }
  0x31   :  { %797 = vmatprep.subr.bf16.mxu1 %v796_v30  ;;  %v368_v45 = vld [vmem:[#allocation5 + $0x470] sm:$0xff]  ;;  %v58_v47 = vld [vmem:[#allocation5 + $0x98] sm:$0xff]  ;;  %v371_v48 = vld [vmem:[#allocation5 + $0x488] sm:$0xff]  ;;  %v674_v50 = vpack.c.bf16 %v53_v42, %v51_v41 }
  0x32   :  { %v373_v49 = vld [vmem:[#allocation5 + $0x498] sm:$0xff]  ;;  %v802_v51 = vpack.c.bf16 %v368_v45, %v366_v44  ;;  %v676_v52 = vpack.c.bf16 %v58_v47, %v56_v46  ;;  %v55_v53 = vld [vmem:[#allocation5 + $0x80] sm:$0xff]  ;;  %v57_v54 = vld [vmem:[#allocation5 + $0x90] sm:$0xff]  ;;  %v168_v46 = vlaneseq }
  0x33   :  { %671 = vmatpush1.bf16.msra.mxu0 %v670_v34  ;;  %v370_v55 = vld [vmem:[#allocation5 + $0x480] sm:$0xff]  ;;  %v804_v56 = vpack.c.bf16 %v373_v49, %v371_v48  ;;  %v372_v57 = vld [vmem:[#allocation5 + $0x490] sm:$0xff]  ;;  %v60_v58 = vld [vmem:[#allocation5 + $0xa8] sm:$0xff]  ;;  %v678_v62 = vpack.c.bf16 %v57_v54, %v55_v53 }
  0x34   :  { %799 = vmatpush1.bf16.msra.mxu1 %v798_v38  ;;  %673 = vmatprep.subr.bf16.mxu0 %v672_v39  ;;  %v62_v59 = vld [vmem:[#allocation5 + $0xb8] sm:$0xff]  ;;  %v375_v60 = vld [vmem:[#allocation5 + $0x4a8] sm:$0xff]  ;;  %v806_v63 = vpack.c.bf16 %v372_v57, %v370_v55  ;;  %v59_v1 = vld [vmem:[#allocation5 + $0xa0] sm:$0xff]  ;;  %vm350_vm0 = vcmp.lt.s32.totalorder %v168_v46, 256 }
  0x35   :  { %801 = vmatprep.subr.bf16.mxu1 %v800_v43  ;;  %v377_v61 = vld [vmem:[#allocation5 + $0x4b8] sm:$0xff]  ;;  %v680_v0 = vpack.c.bf16 %v62_v59, %v60_v58  ;;  %v61_v2 = vld [vmem:[#allocation5 + $0xb0] sm:$0xff]  ;;  %v374_v3 = vld [vmem:[#allocation5 + $0x4a0] sm:$0xff]  ;;  %v1051_v59 = vshrl.u32 %v168_v46, 7 }
  0x36   :  { %v808_v4 = vpack.c.bf16 %v377_v61, %v375_v60  ;;  %v376_v5 = vld [vmem:[#allocation5 + $0x4b0] sm:$0xff]  ;;  %v64_v6 = vld [vmem:[#allocation5 + $0xc8] sm:$0xff]  ;;  %v66_v7 = vld [vmem:[#allocation5 + $0xd8] sm:$0xff]  ;;  %v682_v10 = vpack.c.bf16 %v61_v2, %v59_v1 }
  0x37   :  { %675 = vmatpush1.bf16.msra.mxu0 %v674_v50  ;;  %v379_v8 = vld [vmem:[#allocation5 + $0x4c8] sm:$0xff]  ;;  %v381_v9 = vld [vmem:[#allocation5 + $0x4d8] sm:$0xff]  ;;  %v810_v11 = vpack.c.bf16 %v376_v5, %v374_v3  ;;  %v684_v12 = vpack.c.bf16 %v66_v7, %v64_v6  ;;  %v63_v13 = vld [vmem:[#allocation5 + $0xc0] sm:$0xff] }
  0x38   :  { %803 = vmatpush1.bf16.msra.mxu1 %v802_v51  ;;  %677 = vmatprep.subr.bf16.mxu0 %v676_v52  ;;  %v65_v14 = vld [vmem:[#allocation5 + $0xd0] sm:$0xff]  ;;  %v378_v15 = vld [vmem:[#allocation5 + $0x4c0] sm:$0xff]  ;;  %v812_v16 = vpack.c.bf16 %v381_v9, %v379_v8  ;;  %v68_v18 = vld [vmem:[#allocation5 + $0xe8] sm:$0xff]  ;;  %v174_v8 = vsub.s32 1, %v1051_v59 }
  0x39   :  { %805 = vmatprep.subr.bf16.mxu1 %v804_v56  ;;  %v380_v17 = vld [vmem:[#allocation5 + $0x4d0] sm:$0xff]  ;;  %v70_v19 = vld [vmem:[#allocation5 + $0xf8] sm:$0xff]  ;;  %v383_v20 = vld [vmem:[#allocation5 + $0x4e8] sm:$0xff]  ;;  %v686_v22 = vpack.c.bf16 %v65_v14, %v63_v13 }
  0x3a   :  { %v385_v21 = vld [vmem:[#allocation5 + $0x4f8] sm:$0xff]  ;;  %v814_v23 = vpack.c.bf16 %v380_v17, %v378_v15  ;;  %v688_v24 = vpack.c.bf16 %v70_v19, %v68_v18  ;;  %v67_v25 = vld [vmem:[#allocation5 + $0xe0] sm:$0xff]  ;;  %v69_v26 = vld [vmem:[#allocation5 + $0xf0] sm:$0xff] }
  0x3b   :  { %679 = vmatpush1.bf16.msra.mxu0 %v678_v62  ;;  %v382_v27 = vld [vmem:[#allocation5 + $0x4e0] sm:$0xff]  ;;  %v816_v28 = vpack.c.bf16 %v385_v21, %v383_v20  ;;  %v384_v29 = vld [vmem:[#allocation5 + $0x4f0] sm:$0xff]  ;;  %v72_v30 = vld [vmem:[#allocation5 + $0x108] sm:$0xff]  ;;  %v690_v34 = vpack.c.bf16 %v69_v26, %v67_v25 }
  0x3c   :  { %807 = vmatpush1.bf16.msra.mxu1 %v806_v63  ;;  %681 = vmatprep.subr.bf16.mxu0 %v680_v0  ;;  %v74_v31 = vld [vmem:[#allocation5 + $0x118] sm:$0xff]  ;;  %v387_v32 = vld [vmem:[#allocation5 + $0x508] sm:$0xff]  ;;  %v818_v35 = vpack.c.bf16 %v384_v29, %v382_v27  ;;  %v71_v37 = vld [vmem:[#allocation5 + $0x100] sm:$0xff] }
  0x3d   :  { %809 = vmatprep.subr.bf16.mxu1 %v808_v4  ;;  %v389_v33 = vld [vmem:[#allocation5 + $0x518] sm:$0xff]  ;;  %v692_v36 = vpack.c.bf16 %v74_v31, %v72_v30  ;;  %v73_v38 = vld [vmem:[#allocation5 + $0x110] sm:$0xff]  ;;  %v386_v39 = vld [vmem:[#allocation5 + $0x500] sm:$0xff] }
  0x3e   :  { %v820_v40 = vpack.c.bf16 %v389_v33, %v387_v32  ;;  %v388_v41 = vld [vmem:[#allocation5 + $0x510] sm:$0xff]  ;;  %v76_v42 = vld [vmem:[#allocation5 + $0x128] sm:$0xff]  ;;  %v78_v43 = vld [vmem:[#allocation5 + $0x138] sm:$0xff]  ;;  %v694_v47 = vpack.c.bf16 %v73_v38, %v71_v37 }
  0x3f   :  { %683 = vmatpush1.bf16.msra.mxu0 %v682_v10  ;;  %v391_v44 = vld [vmem:[#allocation5 + $0x528] sm:$0xff]  ;;  %v393_v45 = vld [vmem:[#allocation5 + $0x538] sm:$0xff]  ;;  %v822_v48 = vpack.c.bf16 %v388_v41, %v386_v39  ;;  %v696_v49 = vpack.c.bf16 %v78_v43, %v76_v42  ;;  %v75_v50 = vld [vmem:[#allocation5 + $0x120] sm:$0xff] }
  0x40   :  { %811 = vmatpush1.bf16.msra.mxu1 %v810_v11  ;;  %685 = vmatprep.subr.bf16.mxu0 %v684_v12  ;;  %v77_v51 = vld [vmem:[#allocation5 + $0x130] sm:$0xff]  ;;  %v390_v52 = vld [vmem:[#allocation5 + $0x520] sm:$0xff]  ;;  %v824_v53 = vpack.c.bf16 %v393_v45, %v391_v44  ;;  %v80_v55 = vld [vmem:[#allocation5 + $0x148] sm:$0xff] }
  0x41   :  { %813 = vmatprep.subr.bf16.mxu1 %v812_v16  ;;  %v392_v54 = vld [vmem:[#allocation5 + $0x530] sm:$0xff]  ;;  %v82_v56 = vld [vmem:[#allocation5 + $0x158] sm:$0xff]  ;;  %v395_v57 = vld [vmem:[#allocation5 + $0x548] sm:$0xff]  ;;  %v698_v60 = vpack.c.bf16 %v77_v51, %v75_v50 }
  0x42   :  { %v397_v58 = vld [vmem:[#allocation5 + $0x558] sm:$0xff]  ;;  %v826_v61 = vpack.c.bf16 %v392_v54, %v390_v52  ;;  %v700_v62 = vpack.c.bf16 %v82_v56, %v80_v55  ;;  %v79_v63 = vld [vmem:[#allocation5 + $0x140] sm:$0xff]  ;;  %v81_v0 = vld [vmem:[#allocation5 + $0x150] sm:$0xff] }
  0x43   :  { %687 = vmatpush1.bf16.msra.mxu0 %v686_v22  ;;  %v394_v1 = vld [vmem:[#allocation5 + $0x540] sm:$0xff]  ;;  %v828_v2 = vpack.c.bf16 %v397_v58, %v395_v57  ;;  %v396_v3 = vld [vmem:[#allocation5 + $0x550] sm:$0xff]  ;;  %v84_v4 = vld [vmem:[#allocation5 + $0x168] sm:$0xff]  ;;  %v702_v9 = vpack.c.bf16 %v81_v0, %v79_v63 }
  0x44   :  { %815 = vmatpush1.bf16.msra.mxu1 %v814_v23  ;;  %689 = vmatprep.subr.bf16.mxu0 %v688_v24  ;;  %v86_v5 = vld [vmem:[#allocation5 + $0x178] sm:$0xff]  ;;  %v399_v6 = vld [vmem:[#allocation5 + $0x568] sm:$0xff]  ;;  %v83_v10 = vld [vmem:[#allocation5 + $0x160] sm:$0xff]  ;;  %v830_v11 = vpack.c.bf16 %v396_v3, %v394_v1 }
  0x45   :  { %817 = vmatprep.subr.bf16.mxu1 %v816_v28  ;;  %v401_v7 = vld [vmem:[#allocation5 + $0x578] sm:$0xff]  ;;  %v704_v12 = vpack.c.bf16 %v86_v5, %v84_v4  ;;  %v85_v13 = vld [vmem:[#allocation5 + $0x170] sm:$0xff]  ;;  %v398_v14 = vld [vmem:[#allocation5 + $0x560] sm:$0xff] }
  0x46   :  { %v400_v15 = vld [vmem:[#allocation5 + $0x570] sm:$0xff]  ;;  %v832_v16 = vpack.c.bf16 %v401_v7, %v399_v6  ;;  %v88_v17 = vld [vmem:[#allocation5 + $0x188] sm:$0xff]  ;;  %v90_v18 = vld [vmem:[#allocation5 + $0x198] sm:$0xff]  ;;  %v706_v23 = vpack.c.bf16 %v85_v13, %v83_v10 }
  0x47   :  { %691 = vmatpush1.bf16.msra.mxu0 %v690_v34  ;;  %v1054_v19 = vld [vmem:[#allocation2] sm:$0xf]  ;;  %v403_v20 = vld [vmem:[#allocation5 + $0x588] sm:$0xff]  ;;  %v834_v24 = vpack.c.bf16 %v400_v15, %v398_v14  ;;  %v708_v25 = vpack.c.bf16 %v90_v18, %v88_v17  ;;  %v87_v26 = vld [vmem:[#allocation5 + $0x180] sm:$0xff] }
  0x48   :  { %819 = vmatpush1.bf16.msra.mxu1 %v818_v35  ;;  %693 = vmatprep.subr.bf16.mxu0 %v692_v36  ;;  %v405_v21 = vld [vmem:[#allocation5 + $0x598] sm:$0xff]  ;;  %v175_v22 = vrot.slane %v1054_v19, %v174_v8  ;;  %v89_v27 = vld [vmem:[#allocation5 + $0x190] sm:$0xff]  ;;  %v402_v28 = vld [vmem:[#allocation5 + $0x580] sm:$0xff] }
  0x49   :  { %821 = vmatprep.subr.bf16.mxu1 %v820_v40  ;;  %v836_v29 = vpack.c.bf16 %v405_v21, %v403_v20  ;;  %v404_v30 = vld [vmem:[#allocation5 + $0x590] sm:$0xff]  ;;  %v92_v31 = vld [vmem:[#allocation5 + $0x1a8] sm:$0xff]  ;;  %v94_v32 = vld [vmem:[#allocation5 + $0x1b8] sm:$0xff]  ;;  %v710_v35 = vpack.c.bf16 %v89_v27, %v87_v26  ;;  %v182_v21 = vsub.s32 3, %v1051_v59 }
  0x4a   :  { %252 = vmatprep.mubr.f32.mxu0 %v175_v22  ;;  %v407_v33 = vld [vmem:[#allocation5 + $0x5a8] sm:$0xff]  ;;  %v409_v34 = vld [vmem:[#allocation5 + $0x5b8] sm:$0xff]  ;;  %546 = vmatprep.mubr.f32.mxu1 %v175_v22  ;;  %v838_v36 = vpack.c.bf16 %v404_v30, %v402_v28  ;;  %v712_v37 = vpack.c.bf16 %v94_v32, %v92_v31  ;;  %v91_v38 = vld [vmem:[#allocation5 + $0x1a0] sm:$0xff] }
  0x4b   :  { %695 = vmatpush1.bf16.msra.mxu0 %v694_v47  ;;  %v93_v39 = vld [vmem:[#allocation5 + $0x1b0] sm:$0xff]  ;;  %v406_v40 = vld [vmem:[#allocation5 + $0x5a0] sm:$0xff]  ;;  %v840_v41 = vpack.c.bf16 %v409_v34, %v407_v33  ;;  %v96_v43 = vld [vmem:[#allocation5 + $0x1c8] sm:$0xff] }
  0x4c   :  { %823 = vmatpush1.bf16.msra.mxu1 %v822_v48  ;;  %697 = vmatprep.subr.bf16.mxu0 %v696_v49  ;;  %v408_v42 = vld [vmem:[#allocation5 + $0x5b0] sm:$0xff]  ;;  %v98_v44 = vld [vmem:[#allocation5 + $0x1d8] sm:$0xff]  ;;  %v411_v45 = vld [vmem:[#allocation5 + $0x5c8] sm:$0xff]  ;;  %v714_v48 = vpack.c.bf16 %v93_v39, %v91_v38 }
  0x4d   :  { %825 = vmatprep.subr.bf16.mxu1 %v824_v53  ;;  %v413_v47 = vld [vmem:[#allocation5 + $0x5d8] sm:$0xff]  ;;  %v842_v49 = vpack.c.bf16 %v408_v42, %v406_v40  ;;  %v716_v50 = vpack.c.bf16 %v98_v44, %v96_v43  ;;  %v95_v51 = vld [vmem:[#allocation5 + $0x1c0] sm:$0xff]  ;;  %v97_v52 = vld [vmem:[#allocation5 + $0x1d0] sm:$0xff] }
  0x4e   :  { %v410_v53 = vld [vmem:[#allocation5 + $0x5c0] sm:$0xff]  ;;  %v844_v54 = vpack.c.bf16 %v413_v47, %v411_v45  ;;  %v412_v55 = vld [vmem:[#allocation5 + $0x5d0] sm:$0xff]  ;;  %v100_v56 = vld [vmem:[#allocation5 + $0x1e8] sm:$0xff] }
  0x4f   :  { %699 = vmatpush1.bf16.msra.mxu0 %v698_v60  ;;  %v102_v57 = vld [vmem:[#allocation5 + $0x1f8] sm:$0xff]  ;;  %v415_v58 = vld [vmem:[#allocation5 + $0x5e8] sm:$0xff]  ;;  %v99_v0 = vld [vmem:[#allocation5 + $0x1e0] sm:$0xff] }
  0x50   :  { %827 = vmatpush1.bf16.msra.mxu1 %v826_v61  ;;  %701 = vmatprep.subr.bf16.mxu0 %v700_v62  ;;  %v417_v60 = vld [vmem:[#allocation5 + $0x5f8] sm:$0xff]  ;;  %v718_v61 = vpack.c.bf16 %v97_v52, %v95_v51  ;;  %v846_v62 = vpack.c.bf16 %v412_v55, %v410_v53  ;;  %v720_v63 = vpack.c.bf16 %v102_v57, %v100_v56  ;;  %v101_v1 = vld [vmem:[#allocation5 + $0x1f0] sm:$0xff]  ;;  %v104_v5 = vld [vmem:[#allocation5 + $0x208] sm:$0xff] }
  0x51   :  { %829 = vmatprep.subr.bf16.mxu1 %v828_v2  ;;  %v414_v2 = vld [vmem:[#allocation5 + $0x5e0] sm:$0xff]  ;;  %v848_v3 = vpack.c.bf16 %v417_v60, %v415_v58  ;;  %v416_v4 = vld [vmem:[#allocation5 + $0x5f0] sm:$0xff]  ;;  %v106_v6 = vld [vmem:[#allocation5 + $0x218] sm:$0xff]  ;;  %v722_v10 = vpack.c.bf16 %v101_v1, %v99_v0 }
  0x52   :  { %v419_v7 = vld [vmem:[#allocation5 + $0x608] sm:$0xff]  ;;  %v421_v8 = vld [vmem:[#allocation5 + $0x618] sm:$0xff]  ;;  %v103_v13 = vld [vmem:[#allocation5 + $0x200] sm:$0xff] }
  0x53   :  { %703 = vmatpush1.bf16.msra.mxu0 %v702_v9  ;;  %v170_v9 = vsub.s32 0, %v1051_v59  ;;  %v105_v14 = vld [vmem:[#allocation5 + $0x210] sm:$0xff]  ;;  %v418_v15 = vld [vmem:[#allocation5 + $0x600] sm:$0xff]  ;;  %v108_v18 = vld [vmem:[#allocation5 + $0x228] sm:$0xff] }
  0x54   :  { %831 = vmatpush1.bf16.msra.mxu1 %v830_v11  ;;  %705 = vmatprep.subr.bf16.mxu0 %v704_v12  ;;  %v850_v11 = vpack.c.bf16 %v416_v4, %v414_v2  ;;  %v724_v12 = vpack.c.bf16 %v106_v6, %v104_v5  ;;  %v420_v17 = vld [vmem:[#allocation5 + $0x610] sm:$0xff]  ;;  %v110_v20 = vld [vmem:[#allocation5 + $0x238] sm:$0xff]  ;;  %v107_v28 = vld [vmem:[#allocation5 + $0x220] sm:$0xff] }
  0x55   :  { %833 = vmatprep.subr.bf16.mxu1 %v832_v16  ;;  %v852_v16 = vpack.c.bf16 %v421_v8, %v419_v7  ;;  %v171_v22 = vrot.slane %v1054_v19, %v170_v9  ;;  %v854_v26 = vpack.c.bf16 %v420_v17, %v418_v15  ;;  %v728_v27 = vpack.c.bf16 %v110_v20, %v108_v18  ;;  %v422_v30 = vld [vmem:[#allocation5 + $0x620] sm:$0xff]  ;;  %v424_v32 = vld [vmem:[#allocation5 + $0x630] sm:$0xff]  ;;  %v112_v33 = vld [vmem:[#allocation5 + $0x248] sm:$0xff] }
  0x56   :  { %v114_v34 = vld [vmem:[#allocation5 + $0x258] sm:$0xff]  ;;  %v858_v39 = vpack.c.bf16 %v424_v32, %v422_v30  ;;  %v113_v42 = vld [vmem:[#allocation5 + $0x250] sm:$0xff]  ;;  %v426_v43 = vld [vmem:[#allocation5 + $0x640] sm:$0xff] }
  0x57   :  { %707 = vmatpush1.bf16.msra.mxu0 %v706_v23  ;;  %v423_v23 = vld [vmem:[#allocation5 + $0x628] sm:$0xff]  ;;  %v732_v40 = vpack.c.bf16 %v114_v34, %v112_v33  ;;  %v428_v45 = vld [vmem:[#allocation5 + $0x650] sm:$0xff]  ;;  %v430_v56 = vld [vmem:[#allocation5 + $0x660] sm:$0xff] }
  0x58   :  { %835 = vmatpush1.bf16.msra.mxu1 %v834_v24  ;;  %709 = vmatprep.subr.bf16.mxu0 %v708_v25  ;;  %v425_v24 = vld [vmem:[#allocation5 + $0x638] sm:$0xff]  ;;  %v726_v25 = vpack.c.bf16 %v105_v14, %v103_v13  ;;  %v116_v47 = vld [vmem:[#allocation5 + $0x268] sm:$0xff]  ;;  %v862_v52 = vpack.c.bf16 %v428_v45, %v426_v43  ;;  %v117_v55 = vld [vmem:[#allocation5 + $0x270] sm:$0xff] }
  0x59   :  { %837 = vmatprep.subr.bf16.mxu1 %v836_v29  ;;  %v109_v29 = vld [vmem:[#allocation5 + $0x230] sm:$0xff]  ;;  %v856_v31 = vpack.c.bf16 %v425_v24, %v423_v23  ;;  %v120_v60 = vld [vmem:[#allocation5 + $0x288] sm:$0xff]  ;;  %v434_v5 = vld [vmem:[#allocation5 + $0x680] sm:$0xff] }
  0x5a   :  { %v730_v38 = vpack.c.bf16 %v109_v29, %v107_v28  ;;  %v432_v58 = vld [vmem:[#allocation5 + $0x670] sm:$0xff]  ;;  %v124_v8 = vld [vmem:[#allocation5 + $0x2a8] sm:$0xff]  ;;  %v126_v9 = vld [vmem:[#allocation5 + $0x2b8] sm:$0xff] }
  0x5b   :  { %711 = vmatpush1.bf16.msra.mxu0 %v710_v35  ;;  %v183_v35 = vrot.slane %v1054_v19, %v182_v21  ;;  %v866_v1 = vpack.c.bf16 %v432_v58, %v430_v56  ;;  %v121_v4 = vld [vmem:[#allocation5 + $0x290] sm:$0xff]  ;;  %v744_v14 = vpack.c.bf16 %v126_v9, %v124_v8  ;;  %v123_v15 = vld [vmem:[#allocation5 + $0x2a0] sm:$0xff]  ;;  %v128_v21 = vld [vmem:[#allocation5 + $0x2c8] sm:$0xff] }
  0x5c   :  { %839 = vmatpush1.bf16.msra.mxu1 %v838_v36  ;;  %713 = vmatprep.subr.bf16.mxu0 %v712_v37  ;;  %v427_v36 = vld [vmem:[#allocation5 + $0x648] sm:$0xff]  ;;  %v429_v37 = vld [vmem:[#allocation5 + $0x658] sm:$0xff]  ;;  %v436_v7 = vld [vmem:[#allocation5 + $0x690] sm:$0xff] }
  0x5d   :  { %841 = vmatprep.subr.bf16.mxu1 %v840_v41  ;;  %v111_v41 = vld [vmem:[#allocation5 + $0x240] sm:$0xff]  ;;  %v860_v44 = vpack.c.bf16 %v429_v37, %v427_v36  ;;  %v870_v13 = vpack.c.bf16 %v436_v7, %v434_v5  ;;  %v440_v20 = vld [vmem:[#allocation5 + $0x6b0] sm:$0xff]  ;;  %v443_v23 = vld [vmem:[#allocation5 + $0x6c8] sm:$0xff] }
  0x5e   :  { %v734_v51 = vpack.c.bf16 %v113_v42, %v111_v41  ;;  %v438_v17 = vld [vmem:[#allocation5 + $0x6a0] sm:$0xff]  ;;  %v445_v24 = vld [vmem:[#allocation5 + $0x6d8] sm:$0xff]  ;;  %v129_v29 = vld [vmem:[#allocation5 + $0x2d0] sm:$0xff] }
  0x5f   :  { %715 = vmatpush1.bf16.msra.mxu0 %v714_v48  ;;  %v118_v48 = vld [vmem:[#allocation5 + $0x278] sm:$0xff]  ;;  %v127_v28 = vld [vmem:[#allocation5 + $0x2c0] sm:$0xff]  ;;  %v444_v32 = vld [vmem:[#allocation5 + $0x6d0] sm:$0xff] }
  0x60   :  { %843 = vmatpush1.bf16.msra.mxu1 %v842_v49  ;;  %717 = vmatprep.subr.bf16.mxu0 %v716_v50  ;;  %v431_v49 = vld [vmem:[#allocation5 + $0x668] sm:$0xff]  ;;  %v433_v50 = vld [vmem:[#allocation5 + $0x678] sm:$0xff]  ;;  %v736_v53 = vpack.c.bf16 %v118_v48, %v116_v47  ;;  %v442_v30 = vld [vmem:[#allocation5 + $0x6c0] sm:$0xff]  ;;  %v750_v37 = vpack.c.bf16 %v129_v29, %v127_v28 }
  0x61   :  { %845 = vmatprep.subr.bf16.mxu1 %v844_v54  ;;  %v115_v54 = vld [vmem:[#allocation5 + $0x260] sm:$0xff]  ;;  %v864_v57 = vpack.c.bf16 %v433_v50, %v431_v49  ;;  %v132_v33 = vld [vmem:[#allocation5 + $0x2e8] sm:$0xff]  ;;  %v134_v34 = vld [vmem:[#allocation5 + $0x2f8] sm:$0xff] }
  0x62   :  { %v738_v0 = vpack.c.bf16 %v117_v55, %v115_v54  ;;  %v449_v36 = vld [vmem:[#allocation5 + $0x6f8] sm:$0xff]  ;;  %v133_v41 = vld [vmem:[#allocation5 + $0x2f0] sm:$0xff]  ;;  %v446_v42 = vld [vmem:[#allocation5 + $0x6e0] sm:$0xff] }
  0x63   :  { %719 = vmatpush1.bf16.msra.mxu0 %v718_v61  ;;  %v122_v61 = vld [vmem:[#allocation5 + $0x298] sm:$0xff]  ;;  %v136_v45 = vld [vmem:[#allocation5 + $0x308] sm:$0xff]  ;;  %v137_v54 = vld [vmem:[#allocation5 + $0x310] sm:$0xff] }
  0x64   :  { %847 = vmatpush1.bf16.msra.mxu1 %v846_v62  ;;  %721 = vmatprep.subr.bf16.mxu0 %v720_v63  ;;  %v435_v62 = vld [vmem:[#allocation5 + $0x688] sm:$0xff]  ;;  %v437_v63 = vld [vmem:[#allocation5 + $0x698] sm:$0xff]  ;;  %v740_v2 = vpack.c.bf16 %v122_v61, %v120_v60  ;;  %v450_v55 = vld [vmem:[#allocation5 + $0x700] sm:$0xff] }
  0x65   :  { %849 = vmatprep.subr.bf16.mxu1 %v848_v3  ;;  %v119_v3 = vld [vmem:[#allocation5 + $0x280] sm:$0xff]  ;;  %v868_v6 = vpack.c.bf16 %v437_v63, %v435_v62  ;;  %v138_v47 = vld [vmem:[#allocation5 + $0x318] sm:$0xff]  ;;  %v451_v48 = vld [vmem:[#allocation5 + $0x708] sm:$0xff] }
  0x66   :  { %v453_v49 = vld [vmem:[#allocation5 + $0x718] sm:$0xff]  ;;  %v140_v58 = vld [vmem:[#allocation5 + $0x328] sm:$0xff]  ;;  %v149_v28 = vld [vmem:[#allocation5 + $0x370] sm:$0xff] }
  0x67   :  { %723 = vmatpush1.bf16.msra.mxu0 %v722_v10  ;;  %v439_v10 = vld [vmem:[#allocation5 + $0x6a8] sm:$0xff]  ;;  %v884_v56 = vpack.c.bf16 %v453_v49, %v451_v48  ;;  %v142_v60 = vld [vmem:[#allocation5 + $0x338] sm:$0xff]  ;;  %v462_v29 = vld [vmem:[#allocation5 + $0x760] sm:$0xff] }
  0x68   :  { %851 = vmatpush1.bf16.msra.mxu1 %v850_v11  ;;  %725 = vmatprep.subr.bf16.mxu0 %v724_v12  ;;  %v441_v11 = vld [vmem:[#allocation5 + $0x6b8] sm:$0xff]  ;;  %v742_v12 = vpack.c.bf16 %v121_v4, %v119_v3  ;;  %v455_v61 = vld [vmem:[#allocation5 + $0x728] sm:$0xff]  ;;  %v141_v3 = vld [vmem:[#allocation5 + $0x330] sm:$0xff] }
  0x69   :  { %853 = vmatprep.subr.bf16.mxu1 %v852_v16  ;;  %v125_v16 = vld [vmem:[#allocation5 + $0x2b0] sm:$0xff]  ;;  %v872_v18 = vpack.c.bf16 %v441_v11, %v439_v10  ;;  %v457_v62 = vld [vmem:[#allocation5 + $0x738] sm:$0xff]  ;;  %v454_v4 = vld [vmem:[#allocation5 + $0x720] sm:$0xff] }
  0x6a   :  { %253 = vmatmul.mubr.f32.vlgmr.msra.gmra.mrb[0].mxu0 %v171_v22  ;;  %v888_v5 = vpack.c.bf16 %v457_v62, %v455_v61  ;;  %v144_v7 = vld [vmem:[#allocation5 + $0x348] sm:$0xff]  ;;  %v146_v8 = vld [vmem:[#allocation5 + $0x358] sm:$0xff] }
  0x6b   :  { %727 = vmatpush1.bf16.msra.mxu0 %v726_v25  ;;  %547 = vmatmul.mubr.f32.vlgmr.msra.gmra.mrb[0].mxu1 %v171_v22  ;;  %v130_v22 = vld [vmem:[#allocation5 + $0x2d8] sm:$0xff]  ;;  %v746_v25 = vpack.c.bf16 %v125_v16, %v123_v15  ;;  %v459_v9 = vld [vmem:[#allocation5 + $0x748] sm:$0xff]  ;;  %v145_v15 = vld [vmem:[#allocation5 + $0x350] sm:$0xff] }
  0x6c   :  { %855 = vmatpush1.bf16.msra.mxu1 %v854_v26  ;;  %729 = vmatprep.subr.bf16.mxu0 %v728_v27  ;;  %v874_v26 = vpack.c.bf16 %v440_v20, %v438_v17  ;;  %v748_v27 = vpack.c.bf16 %v130_v22, %v128_v21  ;;  %v461_v10 = vld [vmem:[#allocation5 + $0x758] sm:$0xff]  ;;  %v458_v16 = vld [vmem:[#allocation5 + $0x740] sm:$0xff]  ;;  %v148_v20 = vld [vmem:[#allocation5 + $0x368] sm:$0xff] }
  0x6d   :  { %857 = vmatprep.subr.bf16.mxu1 %v856_v31  ;;  %323 = vmatprep.mubr.f32.mxu0 %v183_v35  ;;  %v876_v31 = vpack.c.bf16 %v445_v24, %v443_v23  ;;  %v892_v17 = vpack.c.bf16 %v461_v10, %v459_v9  ;;  %v150_v21 = vld [vmem:[#allocation5 + $0x378] sm:$0xff]  ;;  %v463_v22 = vld [vmem:[#allocation5 + $0x768] sm:$0xff] }
  0x6e   :  { %617 = vmatprep.mubr.f32.mxu1 %v183_v35  ;;  %v447_v35 = vld [vmem:[#allocation5 + $0x6e8] sm:$0xff]  ;;  %v465_v23 = vld [vmem:[#allocation5 + $0x778] sm:$0xff] }
  0x6f   :  { %731 = vmatpush1.bf16.msra.mxu0 %v730_v38  ;;  %v878_v38 = vpack.c.bf16 %v444_v32, %v442_v30  ;;  %v880_v43 = vpack.c.bf16 %v449_v36, %v447_v35  ;;  %v896_v30 = vpack.c.bf16 %v465_v23, %v463_v22  ;;  %v152_v32 = vld [vmem:[#allocation5 + $0x388] sm:$0xff]  ;;  %v469_v35 = vld [vmem:[#allocation5 + $0x798] sm:$0xff]  ;;  %v1002_v23 = vmov 1966171168  }
  0x70   :  { %859 = vmatpush1.bf16.msra.mxu1 %v858_v39  ;;  %733 = vmatprep.subr.bf16.mxu0 %v732_v40  ;;  %v752_v39 = vpack.c.bf16 %v134_v34, %v132_v33  ;;  %v131_v40 = vld [vmem:[#allocation5 + $0x2e0] sm:$0xff]  ;;  %v154_v33 = vld [vmem:[#allocation5 + $0x398] sm:$0xff]  ;;  %v467_v34 = vld [vmem:[#allocation5 + $0x788] sm:$0xff] }
  0x71   :  { %861 = vmatprep.subr.bf16.mxu1 %v860_v44  ;;  %v448_v44 = vld [vmem:[#allocation5 + $0x6f0] sm:$0xff]  ;;  %v754_v50 = vpack.c.bf16 %v133_v41, %v131_v40  ;;  %v466_v41 = vld [vmem:[#allocation5 + $0x780] sm:$0xff]  ;;  %v473_v48 = vld [vmem:[#allocation5 + $0x7b8] sm:$0xff] }
  0x72   :  { %v153_v40 = vld [vmem:[#allocation5 + $0x390] sm:$0xff]  ;;  %v477_v61 = vld [vmem:[#allocation5 + $0x7d8] sm:$0xff] }
  0x73   :  { %735 = vmatpush1.bf16.msra.mxu0 %v734_v51  ;;  %v882_v51 = vpack.c.bf16 %v448_v44, %v446_v42  ;;  %v900_v42 = vpack.c.bf16 %v469_v35, %v467_v34  ;;  %v156_v44 = vld [vmem:[#allocation5 + $0x3a8] sm:$0xff]  ;;  %v481_v9 = vld [vmem:[#allocation5 + $0x7f8] sm:$0xff] }
  0x74   :  { %863 = vmatpush1.bf16.msra.mxu1 %v862_v52  ;;  %737 = vmatprep.subr.bf16.mxu0 %v736_v53  ;;  %v756_v52 = vpack.c.bf16 %v138_v47, %v136_v45  ;;  %v135_v53 = vld [vmem:[#allocation5 + $0x300] sm:$0xff]  ;;  %v158_v45 = vld [vmem:[#allocation5 + $0x3b8] sm:$0xff]  ;;  %v471_v47 = vld [vmem:[#allocation5 + $0x7a8] sm:$0xff] }
  0x75   :  { %865 = vmatprep.subr.bf16.mxu1 %v864_v57  ;;  %v452_v57 = vld [vmem:[#allocation5 + $0x710] sm:$0xff]  ;;  %v758_v63 = vpack.c.bf16 %v137_v54, %v135_v53  ;;  %v470_v54 = vld [vmem:[#allocation5 + $0x7a0] sm:$0xff] }
  0x76   :  { %v157_v53 = vld [vmem:[#allocation5 + $0x3b0] sm:$0xff] }
  0x77   :  { %739 = vmatpush1.bf16.msra.mxu0 %v738_v0  ;;  %v886_v0 = vpack.c.bf16 %v452_v57, %v450_v55  ;;  %v904_v55 = vpack.c.bf16 %v473_v48, %v471_v47  ;;  %v160_v57 = vld [vmem:[#allocation5 + $0x3c8] sm:$0xff] }
  0x78   :  { %867 = vmatpush1.bf16.msra.mxu1 %v866_v1  ;;  %741 = vmatprep.subr.bf16.mxu0 %v740_v2  ;;  %v760_v1 = vpack.c.bf16 %v142_v60, %v140_v58  ;;  %v139_v2 = vld [vmem:[#allocation5 + $0x320] sm:$0xff]  ;;  %v162_v58 = vld [vmem:[#allocation5 + $0x3d8] sm:$0xff]  ;;  %v475_v60 = vld [vmem:[#allocation5 + $0x7c8] sm:$0xff] }
  0x79   :  { %869 = vmatprep.subr.bf16.mxu1 %v868_v6  ;;  %v456_v6 = vld [vmem:[#allocation5 + $0x730] sm:$0xff]  ;;  %v762_v11 = vpack.c.bf16 %v141_v3, %v139_v2  ;;  %v474_v3 = vld [vmem:[#allocation5 + $0x7c0] sm:$0xff] }
  0x7a   :  { %v161_v2 = vld [vmem:[#allocation5 + $0x3d0] sm:$0xff] }
  0x7b   :  { %743 = vmatpush1.bf16.msra.mxu0 %v742_v12  ;;  %v890_v12 = vpack.c.bf16 %v456_v6, %v454_v4  ;;  %v908_v4 = vpack.c.bf16 %v477_v61, %v475_v60  ;;  %v164_v6 = vld [vmem:[#allocation5 + $0x3e8] sm:$0xff] }
  0x7c   :  { %871 = vmatpush1.bf16.msra.mxu1 %v870_v13  ;;  %745 = vmatprep.subr.bf16.mxu0 %v744_v14  ;;  %v764_v13 = vpack.c.bf16 %v146_v8, %v144_v7  ;;  %v143_v14 = vld [vmem:[#allocation5 + $0x340] sm:$0xff]  ;;  %v166_v7 = vld [vmem:[#allocation5 + $0x3f8] sm:$0xff]  ;;  %v479_v8 = vld [vmem:[#allocation5 + $0x7e8] sm:$0xff] }
  0x7d   :  { %873 = vmatprep.subr.bf16.mxu1 %v872_v18  ;;  %v460_v18 = vld [vmem:[#allocation5 + $0x750] sm:$0xff]  ;;  %v766_v24 = vpack.c.bf16 %v145_v15, %v143_v14  ;;  %v912_v15 = vpack.c.bf16 %v481_v9, %v479_v8 }
  0x7e   :  { %v165_v14 = vld [vmem:[#allocation5 + $0x3f0] sm:$0xff] }
  0x7f   :  { %747 = vmatpush1.bf16.msra.mxu0 %v746_v25  ;;  %v894_v25 = vpack.c.bf16 %v460_v18, %v458_v16  ;;  %v478_v16 = vld [vmem:[#allocation5 + $0x7e0] sm:$0xff]  ;;  %v178_v18 = vsub.s32 2, %v1051_v59 }
  0x80   :  { %875 = vmatpush1.bf16.msra.mxu1 %v874_v26  ;;  %749 = vmatprep.subr.bf16.mxu0 %v748_v27  ;;  %v768_v26 = vpack.c.bf16 %v150_v21, %v148_v20  ;;  %v147_v27 = vld [vmem:[#allocation5 + $0x360] sm:$0xff] }
  0x81   :  { %877 = vmatprep.subr.bf16.mxu1 %v876_v31  ;;  %v464_v31 = vld [vmem:[#allocation5 + $0x770] sm:$0xff]  ;;  %v770_v36 = vpack.c.bf16 %v149_v28, %v147_v27  ;;  %v179_v22 = vrot.slane %v1054_v19, %v178_v18 }
  0x83   :  { %751 = vmatpush1.bf16.msra.mxu0 %v750_v37  ;;  %v898_v37 = vpack.c.bf16 %v464_v31, %v462_v29 }
  0x84   :  { %879 = vmatpush1.bf16.msra.mxu1 %v878_v38  ;;  %753 = vmatprep.subr.bf16.mxu0 %v752_v39  ;;  %v772_v38 = vpack.c.bf16 %v154_v33, %v152_v32  ;;  %v151_v39 = vld [vmem:[#allocation5 + $0x380] sm:$0xff] }
  0x85   :  { %881 = vmatprep.subr.bf16.mxu1 %v880_v43  ;;  %v468_v43 = vld [vmem:[#allocation5 + $0x790] sm:$0xff]  ;;  %v774_v49 = vpack.c.bf16 %v153_v40, %v151_v39 }
  0x87   :  { %755 = vmatpush1.bf16.msra.mxu0 %v754_v50  ;;  %v902_v50 = vpack.c.bf16 %v468_v43, %v466_v41 }
  0x88   :  { %883 = vmatpush1.bf16.msra.mxu1 %v882_v51  ;;  %757 = vmatprep.subr.bf16.mxu0 %v756_v52  ;;  %v776_v51 = vpack.c.bf16 %v158_v45, %v156_v44  ;;  %v155_v52 = vld [vmem:[#allocation5 + $0x3a0] sm:$0xff] }
  0x89   :  { %885 = vmatprep.subr.bf16.mxu1 %v884_v56  ;;  %v472_v56 = vld [vmem:[#allocation5 + $0x7b0] sm:$0xff]  ;;  %v778_v62 = vpack.c.bf16 %v157_v53, %v155_v52 }
  0x8b   :  { %759 = vmatpush1.bf16.msra.mxu0 %v758_v63  ;;  %v906_v63 = vpack.c.bf16 %v472_v56, %v470_v54 }
  0x8c   :  { %887 = vmatpush1.bf16.msra.mxu1 %v886_v0  ;;  %761 = vmatprep.subr.bf16.mxu0 %v760_v1  ;;  %v780_v0 = vpack.c.bf16 %v162_v58, %v160_v57  ;;  %v159_v1 = vld [vmem:[#allocation5 + $0x3c0] sm:$0xff] }
  0x8d   :  { %889 = vmatprep.subr.bf16.mxu1 %v888_v5  ;;  %v476_v5 = vld [vmem:[#allocation5 + $0x7d0] sm:$0xff]  ;;  %v782_v10 = vpack.c.bf16 %v161_v2, %v159_v1 }
  0x8f   :  { %763 = vmatpush1.bf16.msra.mxu0 %v762_v11  ;;  %v910_v11 = vpack.c.bf16 %v476_v5, %v474_v3 }
  0x90   :  { %891 = vmatpush1.bf16.msra.mxu1 %v890_v12  ;;  %765 = vmatprep.subr.bf16.mxu0 %v764_v13  ;;  %v784_v12 = vpack.c.bf16 %v166_v7, %v164_v6  ;;  %v163_v13 = vld [vmem:[#allocation5 + $0x3e0] sm:$0xff] }
  0x91   :  { %893 = vmatprep.subr.bf16.mxu1 %v892_v17  ;;  %v480_v17 = vld [vmem:[#allocation5 + $0x7f0] sm:$0xff]  ;;  %v786_v20 = vpack.c.bf16 %v165_v14, %v163_v13 }
  0x92   :  { %v914_v21 = vpack.c.bf16 %v480_v17, %v478_v16 }
  0x93   :  { %767 = vmatpush1.bf16.msra.mxu0 %v766_v24  ;;  %v334_v24 = vunpack.c.l.s4 %v1002_v23 }
  0x94   :  { %895 = vmatpush1.bf16.msra.mxu1 %v894_v25  ;;  %769 = vmatprep.subr.bf16.mxu0 %v768_v26 }
  0x95   :  { %897 = vmatprep.subr.bf16.mxu1 %v896_v30  ;;  %v335_v25 = vunpack.c.0.s8 %v334_v24 }
  0x97   :  { %771 = vmatpush1.bf16.msra.mxu0 %v770_v36  ;;  %v338_v27 = vsub.s32 %v335_v25, %v1051_v59 }
  0x98   :  { %899 = vmatpush1.bf16.msra.mxu1 %v898_v37  ;;  %773 = vmatprep.subr.bf16.mxu0 %v772_v38 }
  0x99   :  { %901 = vmatprep.subr.bf16.mxu1 %v900_v42 }
  0x9b   :  { %775 = vmatpush1.bf16.msra.mxu0 %v774_v49 }
  0x9c   :  { %903 = vmatpush1.bf16.msra.mxu1 %v902_v50  ;;  %777 = vmatprep.subr.bf16.mxu0 %v776_v51 }
  0x9d   :  { %905 = vmatprep.subr.bf16.mxu1 %v904_v55 }
  0x9f   :  { %779 = vmatpush1.bf16.msra.mxu0 %v778_v62 }
  0xa0   :  { %907 = vmatpush1.bf16.msra.mxu1 %v906_v63  ;;  %781 = vmatprep.subr.bf16.mxu0 %v780_v0 }
  0xa1   :  { %909 = vmatprep.subr.bf16.mxu1 %v908_v4 }
  0xa3   :  { %783 = vmatpush1.bf16.msra.mxu0 %v782_v10 }
  0xa4   :  { %911 = vmatpush1.bf16.msra.mxu1 %v910_v11  ;;  %785 = vmatprep.subr.bf16.mxu0 %v784_v12 }
  0xa5   :  { %913 = vmatprep.subr.bf16.mxu1 %v912_v15 }
  0xa7   :  { %787 = vmatpush1.bf16.msra.mxu0 %v786_v20 }
  0xa8   :  { %915 = vmatpush1.bf16.msra.mxu1 %v914_v21 }
  0xaa   :  { %324 = vmatmul.mubr.f32.vlgmr.msra.gmra.mrb[0].mxu0 %v179_v22 }
  0xab   :  { %618 = vmatmul.mubr.f32.vlgmr.msra.gmra.mrb[0].mxu1 %v179_v22 }
 0x17d   :  { %v325_v26 = vpop.f32.mrb[0].mxu0 }
 0x17e   :  { %v619_v28 = vpop.f32.mrb[0].mxu1  ;;  %v327_v29 = vpop.f32.mrb[1].mxu0 }
 0x17f   :  { %v332_v30 = vcombine.low %v325_v26, %v327_v29  ;;  %v621_v31 = vpop.f32.mrb[1].mxu1 }
 0x180   :  { %v626_v32 = vcombine.low %v619_v28, %v621_v31 }
 0x181   :  { %v339_v33 = vrot.slane %v332_v30, %v338_v27 }
 0x182   :  { %v633_v34 = vrot.slane %v626_v32, %v338_v27 }
 0x183   :  { %v346_v19 = vrot.slane %v339_v33, %v338_v27 }
 0x184   :  { %v640_v35 = vrot.slane %v633_v34, %v338_v27 }
 0x185   :  { %352 = vst.msk [vmem:[#allocation7] ss:$2 sm:$0x3] %vm350_vm0, %v346_v19 }
 0x186   :  { %643 = vst.msk [vmem:[#allocation7 + $0x1] ss:$2 sm:$0x3] %vm350_vm0, %v640_v35 }
 0x187   :  { %981 = shalt.err (!%p978_p6)
}
 0x188   :  { %s982_s10 = scalar_lea.hbm %s1079_s2, 64 }
 0x189   :  { %p983_p7 = scmp.ne.s32.totalorder %s1079_s2, %s982_s10  ;;  %p986_p8 = scmp.lt.u32.totalorder %s982_s10, %s1079_s2 }
 0x18b   :  { %p988_p9 = pnand %p986_p8, %p983_p7 }
 0x18d   :  { %991 = shalt.err (!%p988_p9)
}
 0x18e   :  { %653 = dma.vmem_to_hbm [thread:$0]  %s651_s6, 64, %s1079_s2, [#allocation4]  }
 0x18f   :  { %996 = dma.done.wait [#allocation4], 64  }
 0x190   :  { %997 = vsyncadd [#allocation4], 4294967232 }
 0x191   :  { %657 = vsyncpa [#allocation3], 1 }
 0x192   :  { %658 = vsyncpa [#allocation6], 1 }
 0x193   :  { %659 = vsyncpa [#allocation4], 1 }

</bundles_post_ra>
